<compile_context>
chip_gen: v5e
topology: v5e:2x2
jax: 0.10.0
libtpu: 0.0.40
codegen_flags: <defaults>
</compile_context>

<pallas_src>
import functools

import numpy as np
import jax
import jax.numpy as jnp
from jax.experimental import pallas as pl
from jax.experimental.pallas import tpu as pltpu


def _round_up(x: int, m: int) -> int:
    return (x + m - 1) // m * m


def _bilinear_interp_matrix_np(out_size: int, in_size: int) -> np.ndarray:
    """Row-stochastic (out_size, in_size) matrix W s.t. W @ x is a 1-D bilinear
    resize of x, matching torch.nn.functional.interpolate(mode='bilinear',
    align_corners=False). Built with numpy on the host (trace-time constant)."""
    scale = in_size / out_size
    o = np.arange(out_size, dtype=np.float64)
    src = (o + 0.5) * scale - 0.5
    src = np.maximum(src, 0.0)                       # PyTorch clamps negative coords
    i0 = np.clip(np.floor(src).astype(np.int64), 0, in_size - 1)
    i1 = np.minimum(i0 + 1, in_size - 1)
    lam = src - i0.astype(np.float64)
    W = np.zeros((out_size, in_size), dtype=np.float64)
    rows = np.arange(out_size)
    np.add.at(W, (rows, i0), 1.0 - lam)
    np.add.at(W, (rows, i1), lam)
    return W.astype(np.float32)


def _upsampler_kernel(seed_ref, wh_ref, wwt_ref, out_ref, t_ref):
    """Grid = (NC, H_out tiles, W_out tiles).

    seed_ref: (1, H_in, W_in)  f32   full seed plane
    wh_ref  : (tm, H_in)       bf16  row band of Wh for this row tile
    wwt_ref : (W_in, tn)       bf16  column band of Ww^T for this col tile
    out_ref : (1, tm, tn)      f32
    t_ref   : (tm, W_in)       bf16  VMEM scratch, reused across the j axis
    """
    j = pl.program_id(2)

    @pl.when(j == 0)
    def _():
        # sigmoid in f32 on the VPU/EUP; cast to bf16 only at the MXU input.
        s = jax.nn.sigmoid(seed_ref[0].astype(jnp.float32))
        t = jnp.dot(wh_ref[...], s.astype(jnp.bfloat16),
                    preferred_element_type=jnp.float32)          # (tm, W_in), f32 acc
        t_ref[...] = t.astype(jnp.bfloat16)

    out = jnp.dot(t_ref[...], wwt_ref[...],
                  preferred_element_type=jnp.float32)             # (tm, tn), f32 acc
    out_ref[0] = out.astype(out_ref.dtype)


# Tile targets: lane axis a multiple of 128 so output stores are unmasked full-width
# vst; blocks stay < ~2 MiB double-buffered, safe for v7x's 64 MiB VMEM.
_TM = 256   # output rows per tile
_TN = 512   # output cols per tile (multiple of 128)


@functools.partial(jax.jit, static_argnames=("output_shape",))
def upsampler_forward(seed_param: jnp.ndarray, output_shape) -> jnp.ndarray:
    """seed_param: (N, C, H_in, W_in) float32. Returns (N, C, H_out, W_out) float32."""
    h_out, w_out = int(output_shape[0]), int(output_shape[1])
    n, c, h_in, w_in = seed_param.shape
    nc = n * c

    # Padded output tiling: W_out padded to a multiple of 128 (lane-dense stores),
    # H_out padded to the row tile (multiple of 8).
    if h_out <= _TM:
        tm = _round_up(h_out, 8)
        hout_p = tm
    else:
        tm = _TM
        hout_p = _round_up(h_out, _TM)
    if w_out <= _TN:
        tn = _round_up(w_out, 128)
        wout_p = tn
    else:
        tn = _TN
        wout_p = _round_up(w_out, _TN)

    # Host-built (trace-time constant) interpolation matrices, zero-padded to the
    # padded output extents, bf16 for the MXU. Zero-padded rows/cols contribute
    # nothing, so the padded output region is exactly zero and is sliced away.
    wh_np = np.zeros((hout_p, h_in), dtype=np.float32)
    wh_np[:h_out, :] = _bilinear_interp_matrix_np(h_out, h_in)
    wwt_np = np.zeros((w_in, wout_p), dtype=np.float32)
    wwt_np[:, :w_out] = _bilinear_interp_matrix_np(w_out, w_in).T
    wh = jnp.asarray(wh_np, dtype=jnp.bfloat16)
    wwt = jnp.asarray(wwt_np, dtype=jnp.bfloat16)

    seed_planes = seed_param.reshape(nc, h_in, w_in).astype(jnp.float32)

    grid = (nc, hout_p // tm, wout_p // tn)

    # VMEM budget hint: double-buffered blocks + scratch, with headroom, clamped so
    # it is safe on v7x (64 MiB physical) as well as v5e/v6e.
    block_bytes = 4 * h_in * w_in + 2 * tm * h_in + 2 * w_in * tn + 4 * tm * tn
    vmem_limit = int(min(max(4 * (2 * block_bytes + 2 * tm * w_in), 8 << 20), 32 << 20))

    # TODO(synk): for very large H_in, Wh is band-sparse (2 taps/row); a scalar-
    # prefetched per-row-tile band offset would cut the K contraction and DMA traffic.
    out_padded = pl.pallas_call(
        _upsampler_kernel,
        out_shape=jax.ShapeDtypeStruct((nc, hout_p, wout_p), jnp.float32),
        grid=grid,
        in_specs=[
            pl.BlockSpec((1, h_in, w_in), lambda b, i, j: (b, 0, 0)),
            pl.BlockSpec((tm, h_in), lambda b, i, j: (i, 0)),
            pl.BlockSpec((w_in, tn), lambda b, i, j: (0, j)),
        ],
        out_specs=pl.BlockSpec((1, tm, tn), lambda b, i, j: (b, i, j)),
        scratch_shapes=[pltpu.VMEM((tm, w_in), jnp.bfloat16)],
        compiler_params=pltpu.CompilerParams(
            dimension_semantics=("parallel", "parallel", "arbitrary"),
            vmem_limit_bytes=vmem_limit,
        ),
    )(seed_planes, wh, wwt)

    return out_padded[:, :h_out, :w_out].reshape(n, c, h_out, w_out)


if __name__ == "__main__":
    # --- Config matching the PyTorch module: output_shape=(16, 16), factor=2 ---
    output_shape = (16, 16)
    factor = 2
    h_in, w_in = output_shape[0] // factor, output_shape[1] // factor

    # __init__ initializes the seed parameter to 0.5 everywhere; add a small
    # deterministic perturbation (PRNGKey(0)) so the interpolation is nontrivial.
    key = jax.random.PRNGKey(0)
    seed_param = 0.5 * jnp.ones((1, 1, h_in, w_in), dtype=jnp.float32)
    seed_param = seed_param + 0.01 * jax.random.normal(key, seed_param.shape, jnp.float32)

    out = upsampler_forward(seed_param, output_shape=output_shape)
    out = jax.block_until_ready(out)
    assert out.shape == (1, 1, *output_shape)

    # Pure-JAX f32 separable reference.
    wh_ref = jnp.asarray(_bilinear_interp_matrix_np(output_shape[0], h_in))
    ww_ref = jnp.asarray(_bilinear_interp_matrix_np(output_shape[1], w_in))
    ref = (wh_ref @ jax.nn.sigmoid(seed_param[0, 0]) @ ww_ref.T).reshape(1, 1, *output_shape)
    assert jnp.allclose(out, ref, atol=1e-2, rtol=1e-2), float(jnp.max(jnp.abs(out - ref)))

    # --- A larger shape to exercise the tiled multi-block path + padding/slicing ---
    output_shape2 = (384, 640)
    h2, w2 = output_shape2[0] // 2, output_shape2[1] // 2
    seed2 = 0.5 + 0.05 * jax.random.normal(jax.random.PRNGKey(0), (1, 1, h2, w2), jnp.float32)
    out2 = jax.block_until_ready(upsampler_forward(seed2, output_shape=output_shape2))
    wh2 = jnp.asarray(_bilinear_interp_matrix_np(output_shape2[0], h2))
    ww2 = jnp.asarray(_bilinear_interp_matrix_np(output_shape2[1], w2))
    ref2 = (wh2 @ jax.nn.sigmoid(seed2[0, 0]) @ ww2.T).reshape(1, 1, *output_shape2)
    assert out2.shape == (1, 1, *output_shape2)
    assert jnp.allclose(out2, ref2, atol=2e-2, rtol=2e-2), float(jnp.max(jnp.abs(out2 - ref2)))

    print("KERNEL_OK")
</pallas_src>

<mosaic_0001>
module attributes {stable_mosaic.version = 11 : i64} {
  func.func @_upsampler_kernel(%arg0: i32, %arg1: i32, %arg2: i32, %arg3: memref<1x8x8xf32, #tpu.memory_space<vmem>>, %arg4: memref<16x8xbf16, #tpu.memory_space<vmem>>, %arg5: memref<8x128xbf16, #tpu.memory_space<vmem>>, %arg6: memref<1x16x128xf32, #tpu.memory_space<vmem>>, %arg7: memref<16x8xbf16, #tpu.memory_space<vmem>>) attributes {dimension_semantics = [#tpu.dimension_semantics<parallel>, #tpu.dimension_semantics<parallel>, #tpu.dimension_semantics<arbitrary>], iteration_bounds = array<i64: 1, 1, 1>, scalar_prefetch = 0 : i64, scratch_operands = 1 : i64, tpu.core_type = #tpu.core_type<tc>, window_params = [{transform_indices = @transform_0, window_bounds = array<i64: 1, 8, 8>}, {transform_indices = @transform_1, window_bounds = array<i64: 16, 8>}, {transform_indices = @transform_2, window_bounds = array<i64: 8, 128>}, {transform_indices = @transform_3, window_bounds = array<i64: 1, 16, 128>}]} {
    %c0_i32 = arith.constant 0 : i32
    %0 = arith.cmpi eq, %arg2, %c0_i32 : i32
    %1 = arith.extui %0 : i1 to i32
    %c0_i32_0 = arith.constant 0 : i32
    %2 = arith.cmpi ne, %1, %c0_i32_0 : i32
    scf.if %2 {
      %c0_7 = arith.constant 0 : index
      %c0_8 = arith.constant 0 : index
      %c0_9 = arith.constant 0 : index
      %9 = vector.load %arg3[%c0_7, %c0_8, %c0_9] : memref<1x8x8xf32, #tpu.memory_space<vmem>>, vector<1x8x8xf32>
      %10 = vector.shape_cast %9 : vector<1x8x8xf32> to vector<8x8xf32>
      %11 = arith.negf %10 : vector<8x8xf32>
      %12 = math.exp %11 : vector<8x8xf32>
      %cst_10 = arith.constant 1.000000e+00 : f32
      %13 = vector.broadcast %cst_10 : f32 to vector<8x8xf32>
      %14 = arith.addf %13, %12 : vector<8x8xf32>
      %15 = arith.divf %13, %14 : vector<8x8xf32>
      %c0_11 = arith.constant 0 : index
      %c0_12 = arith.constant 0 : index
      %16 = vector.load %arg4[%c0_11, %c0_12] : memref<16x8xbf16, #tpu.memory_space<vmem>>, vector<16x8xbf16>
      %17 = arith.truncf %15 : vector<8x8xf32> to vector<8x8xbf16>
      %cst_13 = arith.constant dense<0.000000e+00> : vector<16x8xf32>
      %18 = tpu.matmul %16, %17, %cst_13 {dimension_numbers = #tpu.dot_dimension_numbers<[1], [0], [0], [1], [0, 0, 1, 1], [], []>} : vector<16x8xbf16>, vector<8x8xbf16>, vector<16x8xf32> -> vector<16x8xf32>
      %19 = arith.truncf %18 : vector<16x8xf32> to vector<16x8xbf16>
      %c0_14 = arith.constant 0 : index
      %c0_15 = arith.constant 0 : index
      %20 = vector.load %arg7[%c0_14, %c0_15] : memref<16x8xbf16, #tpu.memory_space<vmem>>, vector<16x8xbf16>
      tpu.vector_store %arg7[%c0_14, %c0_15], %19 {strides = array<i32>} : memref<16x8xbf16, #tpu.memory_space<vmem>>, vector<16x8xbf16>,
    } else {
    }
    %c0 = arith.constant 0 : index
    %c0_1 = arith.constant 0 : index
    %3 = vector.load %arg7[%c0, %c0_1] : memref<16x8xbf16, #tpu.memory_space<vmem>>, vector<16x8xbf16>
    %c0_2 = arith.constant 0 : index
    %c0_3 = arith.constant 0 : index
    %4 = vector.load %arg5[%c0_2, %c0_3] : memref<8x128xbf16, #tpu.memory_space<vmem>>, vector<8x128xbf16>
    %cst = arith.constant dense<0.000000e+00> : vector<16x128xf32>
    %5 = tpu.matmul %3, %4, %cst {dimension_numbers = #tpu.dot_dimension_numbers<[1], [0], [0], [1], [0, 0, 1, 1], [], []>} : vector<16x8xbf16>, vector<8x128xbf16>, vector<16x128xf32> -> vector<16x128xf32>
    %c0_4 = arith.constant 0 : index
    %c0_5 = arith.constant 0 : index
    %c0_6 = arith.constant 0 : index
    %6 = vector.load %arg6[%c0_4, %c0_5, %c0_6] : memref<1x16x128xf32, #tpu.memory_space<vmem>>, vector<1x16x128xf32>
    %7 = vector.shape_cast %6 : vector<1x16x128xf32> to vector<16x128xf32>
    %8 = vector.shape_cast %5 : vector<16x128xf32> to vector<1x16x128xf32>
    tpu.vector_store %arg6[%c0_4, %c0_5, %c0_6], %8 {strides = array<i32>} : memref<1x16x128xf32, #tpu.memory_space<vmem>>, vector<1x16x128xf32>,
    return
  }
  func.func @transform_0(%arg0: i32, %arg1: i32, %arg2: i32) -> (i32, i32, i32) {
    %c0_i32 = arith.constant 0 : i32
    %c0_i32_0 = arith.constant 0 : i32
    %c0_i32_1 = arith.constant 0 : i32
    return %arg0, %c0_i32, %c0_i32_0 : i32, i32, i32
  }
  func.func @transform_1(%arg0: i32, %arg1: i32, %arg2: i32) -> (i32, i32) {
    %c0_i32 = arith.constant 0 : i32
    %c0_i32_0 = arith.constant 0 : i32
    return %arg1, %c0_i32 : i32, i32
  }
  func.func @transform_2(%arg0: i32, %arg1: i32, %arg2: i32) -> (i32, i32) {
    %c0_i32 = arith.constant 0 : i32
    %c0_i32_0 = arith.constant 0 : i32
    return %c0_i32, %arg2 : i32, i32
  }
  func.func @transform_3(%arg0: i32, %arg1: i32, %arg2: i32) -> (i32, i32, i32) {
    %c0_i32 = arith.constant 0 : i32
    return %arg0, %arg1, %arg2 : i32, i32, i32
  }
}

</mosaic_0001>

<bundles_post_ra>
// kernel: upsampler_forward.1
= control target key start
LH: loop header
LB: loop body
LE: loop exit
PB: predicated region body
PF: predicated region fallthrough
CT: control target
= control target key end

     0   :  { %8 = vsyncpa [#allocation4], 0  ;;  %s293_s0 = inlined_call_operand.hbm [shape: f32[1,8,8], index: 0, kind: input, shape index: {}]   ;;  %s294_s1 = inlined_call_operand.hbm [shape: bf16[16,8], index: 1, kind: input, shape index: {}]   ;;  %s295_s2 = inlined_call_operand.hbm [shape: bf16[8,128], index: 2, kind: input, shape index: {}]   ;;  %s296_s3 = inlined_call_operand.vmem [shape: f32[1,16,128], index: 3, kind: output, shape index: {}]  }
   0x1   :  { %9 = vsyncpa [#allocation6], 0  ;;  %s25_s14 = sshll.u32 %s294_s1, 4  ;;  %s253_s15 = smov [#allocation5]   ;;  %s26_s14 = int_to_ptr.hbm [resolvable:$true] %s25_s14 }
   0x2   :  { %s27_s16 = sshll.u32 %s253_s15, 4  ;;  %s15_s19 = sshll.u32 %s293_s0, 4  ;;  %s28_s16 = int_to_ptr.vmem [resolvable:$true] %s27_s16  ;;  %s16_s19 = int_to_ptr.hbm [resolvable:$true] %s15_s19 }
   0x3   :  { %s254_s20 = smov 64   ;;  %s255_s21 = smov 4  }
   0x4   :  { %33 = dma.hbm_to_vmem [thread:$0]  %s26_s14, 128, %s28_s16, [#allocation6], %s254_s20, %s254_s20, %s255_s21  }
   0x5   :  { %s256_s22 = smov [#allocation3]   ;;  %s39_s26 = sshll.u32 %s295_s2, 4  ;;  %s40_s26 = int_to_ptr.hbm [resolvable:$true] %s39_s26 }
   0x6   :  { %s17_s23 = sshll.u32 %s256_s22, 4  ;;  %s257_s1 = smov [#allocation7]   ;;  %s18_s23 = int_to_ptr.vmem [resolvable:$true] %s17_s23 }
   0x7   :  { %20 = dma.hbm_to_vmem [thread:$0]  %s16_s19, 128, %s18_s23, [#allocation4]  }
   0x8   :  { %s41_s27 = sshll.u32 %s257_s1, 4  ;;  %s42_s27 = int_to_ptr.vmem [resolvable:$true] %s41_s27 }
   0x9   :  { %44 = dma.hbm_to_vmem [thread:$0]  %s40_s26, 64, %s42_s27, [#allocation6]  }
   0xa   :  { %249 = dma.done.wait [#allocation4], 128  }
   0xb   :  { %250 = vsyncadd [#allocation4], 4294967168 }
   0xc   :  { %251 = dma.done.wait [#allocation6], 192  }
   0xd   :  { %252 = vsyncadd [#allocation6], 4294967104  ;;  %v62_v0 = vld [vmem:[#allocation3] sm:$0xff]  ;;  %vm94_vm4 = vcmask 1043456   ;;  %v166_v16 = vld [vmem:[#allocation5] sm:$0xff]  ;;  %vm90_vm5 = vcmask 64512  }
   0xe   :  { %v155_v1 = vmul.f32 -1.442695, %v62_v0  ;;  %v119_v17 = vld [vmem:[#allocation7] sm:$0xf]  ;;  %vm114_vm6 = vcmask 60416  }
   0xf   :  { %v131_v18 = vsel %vm94_vm4, %v119_v17, 0 }
  0x10   :  { %173 = vpow2.f32 %v155_v1  ;;  %140 = vmatpush.bf16.msra.mxu1 %v131_v18 }
  0x16   :  { %v174_v2 = vpop.eup %173 }
  0x17   :  { %v66_v3 = vadd.f32 1.0, %v174_v2 }
  0x19   :  { %175 = vrcp.f32 %v66_v3  ;;  %v78_v6 = vand.u32 2147483648, %v66_v3  ;;  %vm72_vm0 = vweird.f32 %v66_v3  ;;  %v76_v8 = vand.u32 2147483647, %v66_v3 }
  0x1b   :  { %v79_v10 = vor.u32 1.1754944e-38, %v78_v6  ;;  %vm77_vm3 = vcmp.eq.f32.partialorder %v76_v8, 8.507059e+37 }
  0x1f   :  { %v176_v4 = vpop.eup %175 }
  0x20   :  { %v68_v5 = vmul.f32 %v176_v4, %v66_v3  ;;  %vm73_vm1 = vweird.f32 %v176_v4 }
  0x21   :  { %vm74_vm2 = vmor %vm72_vm0, %vm73_vm1 }
  0x22   :  { %v69_v7 = vsub.f32 1.0, %v68_v5 }
  0x24   :  { %v70_v9 = vmul.f32 %v176_v4, %v69_v7 }
  0x26   :  { %v71_v11 = vadd.f32 %v176_v4, %v70_v9 }
  0x28   :  { %v75_v12 = vsel %vm74_vm2, %v176_v4, %v71_v11 }
  0x29   :  { %v80_v13 = vsel %vm77_vm3, %v79_v10, %v75_v12 }
  0x2a   :  { %v84_v14 = vpack.c.bf16 %v80_v13, %v80_v13 }
  0x2c   :  { %v96_v15 = vsel %vm94_vm4, %v84_v14, 0 }
  0x2d   :  { %105 = vmatpush.bf16.msra.mxu0 %v96_v15 }
  0x30   :  { %160 = vmatmul.msk.bf16.vlgmr.msra.gmra.mxu0 %vm90_vm5, %v166_v16 }
  0xad   :  { %v107_v19 = vpop.f32.mrf.mxu0 }
  0xae   :  { %v112_v20 = vpack.c.bf16 %v107_v19, %v107_v19 }
  0xb0   :  { %115 = vst.msk [vmem:[#allocation2] sm:$0xf] %vm114_vm6, %v112_v20 }
  0xb5   :  { %v109_v21 = vpop.f32.mrf.mxu0 }
  0xb6   :  { %v113_v22 = vpack.c.bf16 %v109_v21, %v109_v21 }
  0xb8   :  { %116 = vst.msk [vmem:[#allocation2 + $0x4] sm:$0xf] %vm114_vm6, %v113_v22 }
  0xbf   :  { %v167_v23 = vld [vmem:[#allocation2] sm:$0xff] }
  0xc0   :  { %165 = vmatmul.msk.bf16.vlgmr.msra.gmra.mxu1 %vm90_vm5, %v167_v23 }
 0x13d   :  { %v142_v24 = vpop.f32.mrf.mxu1 }
 0x13e   :  { %147 = vst [vmem:[%s296_s3] sm:$0xff] %v142_v24 }
 0x145   :  { %v144_v25 = vpop.f32.mrf.mxu1 }
 0x146   :  { %148 = vst [vmem:[%s296_s3 + $0x8] sm:$0xff] %v144_v25 }
 0x147   :  { %153 = vsyncpa [#allocation4], 1 }
 0x148   :  { %154 = vsyncpa [#allocation6], 1 }

</bundles_post_ra>
